<compile_context>
chip_gen: v7x
topology: tpu7x:2x2x1
jax: 0.10.0
libtpu: 0.0.40
codegen_flags: <defaults>
</compile_context>

<pallas_src>
import jax
import jax.numpy as jnp
from jax.experimental import pallas as pl
from jax.experimental.pallas import tpu as pltpu

INPUT_FEATURES = 2
OUTPUT_NEURONS = 1

LANES = 128       # lane width of a vreg
SUBLANES = 8      # sublane depth of a 32-bit vreg

# 4096 sublane-rows * 128 lanes = 2^19 batch elements per grid step.
# Per-step DMA: 4 MiB in + 2 MiB out; double-buffered footprint ~12 MiB.
DEFAULT_ROWS_PER_TILE = 4096


def linear_tanh_kernel(params_ref, x_ref, o_ref):
    # params_ref: SMEM (3,) f32 = [w0, w1, b]
    # x_ref:      VMEM (INPUT_FEATURES, TB_S, 128)  (batch on sublanes+lanes)
    # o_ref:      VMEM (TB_S, 128)
    w0 = params_ref[0]
    w1 = params_ref[1]
    b = params_ref[2]
    # VPU scalar-broadcast FMAs over the length-2 K axis (no MXU), then tanh
    # on the EUP.  Upcast so bf16 inputs work on all generations (incl. v5e).
    x0 = x_ref[0].astype(jnp.float32)
    x1 = x_ref[1].astype(jnp.float32)
    z = x0 * w0 + x1 * w1 + b
    o_ref[...] = jnp.tanh(z)


def pack_params(weight, bias):
    """Pack PyTorch-layout (OUT, IN) weight and (OUT,) bias into one flat f32
    vector.  Done ONCE, hoisted out of the per-call path."""
    assert weight.shape == (OUTPUT_NEURONS, INPUT_FEATURES), weight.shape
    assert bias.shape == (OUTPUT_NEURONS,), bias.shape
    return jnp.concatenate(
        [weight.reshape(-1), bias.reshape(-1)]).astype(jnp.float32)


def _round_up(n, m):
    return ((n + m - 1) // m) * m


def _choose_rows_per_tile(n_rows, rows_per_tile):
    """Pick the sublane-row tile: big (for DMA efficiency), multiple of 8
    (for (8,128) alignment), and giving >=2 grid steps when possible so
    v7x's two TensorCores both get work via dimension_semantics=parallel."""
    if n_rows <= rows_per_tile:
        if n_rows >= 2 * SUBLANES:
            return _round_up(pl.cdiv(n_rows, 2), SUBLANES)
        return n_rows  # tiny input: single full-extent block (always legal)
    return rows_per_tile


def neural_network_forward_feature_major(x_fm, params, *,
                                         rows_per_tile=DEFAULT_ROWS_PER_TILE):
    """Optimized entry point: x_fm is (INPUT_FEATURES, B), f32 or bf16.

    Returns (B, OUTPUT_NEURONS) float32 = tanh(x @ W.T + b).
    """
    assert x_fm.shape[0] == INPUT_FEATURES
    B = x_fm.shape[1]

    # Pad batch to a multiple of 128 so it reshapes onto sublanes+lanes
    # (pad-then-slice; zeros keep tanh finite in the discarded tail).
    Bp = _round_up(B, LANES)
    if Bp != B:
        x_fm = jnp.pad(x_fm, ((0, 0), (0, Bp - B)))
    n_rows = Bp // LANES
    x3 = x_fm.reshape(INPUT_FEATURES, n_rows, LANES)  # free row-major reshape

    rows_tile = _choose_rows_per_tile(n_rows, rows_per_tile)
    grid = (pl.cdiv(n_rows, rows_tile),)

    out3 = pl.pallas_call(
        linear_tanh_kernel,
        out_shape=jax.ShapeDtypeStruct((n_rows, LANES), jnp.float32),
        grid=grid,
        in_specs=[
            # 12 bytes of parameters: SMEM, read as scalars.
            pl.BlockSpec(memory_space=pltpu.MemorySpace.SMEM),
            # Batch-tiled, sublane+lane dense activation tile.
            pl.BlockSpec((INPUT_FEATURES, rows_tile, LANES),
                         lambda i: (0, i, 0)),
        ],
        out_specs=pl.BlockSpec((rows_tile, LANES), lambda i: (i, 0)),
        compiler_params=pltpu.CompilerParams(
            dimension_semantics=("parallel",),   # batch axis shards across TCs
            vmem_limit_bytes=32 * 1024 * 1024,   # headroom on every generation
        ),
    )(params, x3)

    # Free reshape + drop the padded tail, then restore (B, OUTPUT_NEURONS).
    return out3.reshape(Bp)[:B].reshape(B, OUTPUT_NEURONS)


def neural_network_forward(x, params, **kw):
    """Spec-compatible entry point: x is (B, INPUT_FEATURES) like nn.Linear.

    NOTE: the transpose below is a full extra HBM pass (~57% of total traffic
    for this memory-bound op); prefer producing the (INPUT_FEATURES, B)
    layout upstream and calling neural_network_forward_feature_major.
    """
    return neural_network_forward_feature_major(
        jnp.asarray(x).astype(jnp.float32).T, params, **kw)


if __name__ == "__main__":
    key = jax.random.PRNGKey(0)
    kx1, kx2, kw, kb = jax.random.split(key, 4)

    # Deterministic parameter init mimicking nn.Linear's U(-1/sqrt(fan_in), .)
    bound = 1.0 / (INPUT_FEATURES ** 0.5)
    weight = jax.random.uniform(
        kw, (OUTPUT_NEURONS, INPUT_FEATURES), jnp.float32, -bound, bound)
    bias = jax.random.uniform(
        kb, (OUTPUT_NEURONS,), jnp.float32, -bound, bound)
    params = pack_params(weight, bias)  # packed once, hoisted out of the call

    # 1) Small spec-consistent check (B=8) through the (B, 2) compat entry.
    B_small = 8
    x_small = jax.random.normal(kx1, (B_small, INPUT_FEATURES), jnp.float32)
    out_small = jax.block_until_ready(neural_network_forward(x_small, params))
    ref_small = jnp.tanh(x_small @ weight.T + bias)
    assert out_small.shape == (B_small, OUTPUT_NEURONS)
    assert jnp.allclose(out_small, ref_small, atol=1e-5), "small-batch mismatch"

    # 2) Moderate batch exercising the tiled sublane+lane-dense path with a
    #    multi-step ("parallel") grid via the transpose-free entry point.
    B_big = 4096  # -> 32 sublane-rows -> 2 grid steps of (2, 16, 128) tiles
    x_big_fm = jax.random.normal(kx2, (INPUT_FEATURES, B_big), jnp.float32)
    out_big = jax.block_until_ready(
        neural_network_forward_feature_major(x_big_fm, params))
    ref_big = jnp.tanh(x_big_fm.T @ weight.T + bias)
    assert out_big.shape == (B_big, OUTPUT_NEURONS)
    assert jnp.allclose(out_big, ref_big, atol=1e-5), "tiled-batch mismatch"

    print("KERNEL_OK")
</pallas_src>

<mosaic_0001>
module attributes {stable_mosaic.version = 11 : i64} {
  func.func @linear_tanh_kernel(%arg0: i32, %arg1: memref<3xf32, #tpu.memory_space<smem>>, %arg2: memref<2x1x128xf32, #tpu.memory_space<vmem>>, %arg3: memref<1x128xf32, #tpu.memory_space<vmem>>) attributes {dimension_semantics = [#tpu.dimension_semantics<parallel>], iteration_bounds = array<i64: 1>, scalar_prefetch = 0 : i64, scratch_operands = 0 : i64, tpu.core_type = #tpu.core_type<tc>, window_params = [{transform_indices = @transform_0, window_bounds = array<i64: 3>}, {transform_indices = @transform_1, window_bounds = array<i64: 2, 1, 128>}, {transform_indices = @transform_2, window_bounds = array<i64: 1, 128>}]} {
    %c0 = arith.constant 0 : index
    %0 = memref.load %arg1[%c0] : memref<3xf32, #tpu.memory_space<smem>>
    %c1 = arith.constant 1 : index
    %1 = memref.load %arg1[%c1] : memref<3xf32, #tpu.memory_space<smem>>
    %c2 = arith.constant 2 : index
    %2 = memref.load %arg1[%c2] : memref<3xf32, #tpu.memory_space<smem>>
    %c0_0 = arith.constant 0 : index
    %c0_1 = arith.constant 0 : index
    %c0_2 = arith.constant 0 : index
    %3 = vector.load %arg2[%c0_0, %c0_1, %c0_2] : memref<2x1x128xf32, #tpu.memory_space<vmem>>, vector<1x1x128xf32>
    %4 = vector.shape_cast %3 : vector<1x1x128xf32> to vector<1x128xf32>
    %c1_3 = arith.constant 1 : index
    %c0_4 = arith.constant 0 : index
    %c0_5 = arith.constant 0 : index
    %5 = vector.load %arg2[%c1_3, %c0_4, %c0_5] : memref<2x1x128xf32, #tpu.memory_space<vmem>>, vector<1x1x128xf32>
    %6 = vector.shape_cast %5 : vector<1x1x128xf32> to vector<1x128xf32>
    %7 = vector.broadcast %0 : f32 to vector<1x128xf32>
    %8 = arith.mulf %4, %7 : vector<1x128xf32>
    %9 = vector.broadcast %1 : f32 to vector<1x128xf32>
    %10 = arith.mulf %6, %9 : vector<1x128xf32>
    %11 = arith.addf %8, %10 : vector<1x128xf32>
    %12 = vector.broadcast %2 : f32 to vector<1x128xf32>
    %13 = arith.addf %11, %12 : vector<1x128xf32>
    %14 = math.tanh %13 : vector<1x128xf32>
    %c0_6 = arith.constant 0 : index
    %c0_7 = arith.constant 0 : index
    %15 = vector.load %arg3[%c0_6, %c0_7] : memref<1x128xf32, #tpu.memory_space<vmem>>, vector<1x128xf32>
    tpu.vector_store %arg3[%c0_6, %c0_7], %14 {strides = array<i32>} : memref<1x128xf32, #tpu.memory_space<vmem>>, vector<1x128xf32>,
    return
  }
  func.func @transform_0(%arg0: i32) -> i32 {
    %c0_i32 = arith.constant 0 : i32
    %c0_i32_0 = arith.constant 0 : i32
    return %c0_i32 : i32
  }
  func.func @transform_1(%arg0: i32) -> (i32, i32, i32) {
    %c0_i32 = arith.constant 0 : i32
    %c0_i32_0 = arith.constant 0 : i32
    %c0_i32_1 = arith.constant 0 : i32
    return %c0_i32, %arg0, %c0_i32_0 : i32, i32, i32
  }
  func.func @transform_2(%arg0: i32) -> (i32, i32) {
    %c0_i32 = arith.constant 0 : i32
    %c0_i32_0 = arith.constant 0 : i32
    return %arg0, %c0_i32 : i32, i32
  }
}

</mosaic_0001>

<bundles_post_ra>
// kernel: tpu_custom_call.1
= control target key start
LH: loop header
LB: loop body
LE: loop exit
PB: predicated region body
PF: predicated region fallthrough
CT: control target
= control target key end

     0   :  { %7 = vsyncpa [#allocation4], 0  ;;  %s143_s0 = inlined_call_operand.hbm [shape: f32[3], index: 0, kind: input, shape index: {}]   ;;  %s144_s1 = inlined_call_operand.vmem [shape: f32[2,1,128], index: 1, kind: input, shape index: {}]   ;;  %s145_s2 = inlined_call_operand.hbm [shape: f32[1,128], index: 2, kind: output, shape index: {}]  }
   0x1   :  { %8 = vsyncpa [#allocation3], 0  ;;  %s60_s11 = scalar_lea.hbm %s143_s0, 16 }
   0x2   :  { %p61_p0 = scmp.ne.s32.totalorder %s143_s0, %s60_s11  ;;  %p64_p1 = scmp.lt.u32.totalorder %s60_s11, %s143_s0 }
   0x4   :  { %p66_p2 = pnand %p64_p1, %p61_p0 }
   0x6   :  { %69 = shalt.err (!%p66_p2)
}
   0x7   :  { %s96_s16 = smov [#allocation2]  }
   0x8   :  { %16 = dma.hbm_to_smem %s143_s0, 16, %s96_s16, [#allocation4]  }
   0x9   :  { %92 = dma.done.wait [#allocation4], 16  }
   0xa   :  { %93 = vsyncadd [#allocation4], 4294967280 }
   0xb   :  { %22 = sfence }
   0xc   :  { %s23_s19 = sld [smem:[#allocation2]]  ;;  %s53_s20 = sld [smem:[#allocation2 + $0x1]]  ;;  %v26_v0 = vld [vmem:[%s144_s1] sm:$0x1]  ;;  %v55_v1 = vld [vmem:[%s144_s1 + $0x1] sm:$0x1] }
   0xd   :  { %s54_s21 = sld [smem:[#allocation2 + $0x2]]  ;;  %s97_s0 = smov [#allocation5]  }
   0xe   :  { %s44_s26 = sshll.u32 %s97_s0, 4  ;;  %s45_s26 = int_to_ptr.vmem [resolvable:$true] %s44_s26 }
   0xf   :  { %s70_s27 = scalar_lea.vmem %s45_s26, 16  ;;  %s74_s28 = scalar_lea.vmem %s45_s26, 32 }
  0x10   :  { %p71_p3 = scmp.ne.s32.totalorder %s45_s26, %s70_s27  ;;  %p75_p4 = scmp.lt.s32.totalorder %s45_s26, %s45_s26 }
  0x11   :  { %p76_p5 = scmp.lt.s32.totalorder %s74_s28, %s70_s27 }
  0x12   :  { %v29_v2 = vstv %s23_s19  ;;  %v31_v3 = vstv %s53_s20 }
  0x13   :  { %v30_v4 = vmul.f32 %v29_v2, %v26_v0  ;;  %v32_v5 = vmul.f32 %v55_v1, %v31_v3  ;;  %v34_v6 = vstv %s54_s21  ;;  %p77_p6 = por %p76_p5, %p75_p4 }
  0x15   :  { %v33_v7 = vadd.f32 %v32_v5, %v30_v4  ;;  %p78_p7 = pnand %p77_p6, %p71_p3 }
  0x17   :  { %v35_v8 = vadd.f32 %v34_v6, %v33_v7 }
  0x19   :  { %58 = vtanh.f32 %v35_v8 }
  0x23   :  { %v59_v9 = vpop.eup %58 }
  0x24   :  { %37 = vst [vmem:[#allocation5] sm:$0x1] %v59_v9 }
  0x25   :  { %81 = shalt.err (!%p78_p7)
}
  0x26   :  { %s82_s30 = scalar_lea.hbm %s145_s2, 16 }
  0x27   :  { %p83_p8 = scmp.ne.s32.totalorder %s145_s2, %s82_s30  ;;  %p86_p9 = scmp.lt.u32.totalorder %s82_s30, %s145_s2 }
  0x29   :  { %p88_p10 = pnand %p86_p9, %p83_p8 }
  0x2b   :  { %91 = shalt.err (!%p88_p10)
}
  0x2c   :  { %47 = dma.vmem_to_hbm [thread:$0]  %s45_s26, 16, %s145_s2, [#allocation3]  }
  0x2d   :  { %94 = dma.done.wait [#allocation3], 16  }
  0x2e   :  { %95 = vsyncadd [#allocation3], 4294967280 }
  0x2f   :  { %51 = vsyncpa [#allocation3], 1 }
  0x30   :  { %52 = vsyncpa [#allocation4], 1 }

</bundles_post_ra>
